<compile_context>
chip_gen: v7x
topology: tpu7x:2x2x1
jax: 0.10.0
libtpu: 0.0.40
codegen_flags: <defaults>
</compile_context>

<pallas_src>
import functools

import jax
import jax.numpy as jnp
from jax.experimental import pallas as pl
from jax.experimental.pallas import tpu as pltpu


def _infonce_kernel(pc_ref, sd_t_ref, sd_row_ref, sd_inv_lane_ref, sd_inv_row_ref,
                    out_ref,
                    col_s_ref, col_m_ref, row_acc_ref, diag_acc_ref,
                    *, inv_temp: float, use_shared_exp: bool, mxu_precision):
    t = pl.program_id(0)
    nt = pl.num_programs(0)
    b = sd_t_ref.shape[1]                       # full batch (lane dim of resident sd^T)
    inv_t = jnp.float32(inv_temp)
    # rsqrt(max(ssq, eps^2)) == 1 / max(||x||, 1e-12)  -> identical to F.normalize
    eps2 = jnp.float32(1e-24)

    @pl.when(t == 0)
    def _init():
        col_s_ref[...] = jnp.zeros_like(col_s_ref)        # running column sum(exp)
        col_m_ref[...] = jnp.full_like(col_m_ref, -jnp.inf)  # running column max (fallback)
        row_acc_ref[...] = jnp.zeros_like(row_acc_ref)    # sum of row logsumexp
        diag_acc_ref[...] = jnp.zeros_like(diag_acc_ref)  # sum of diagonal logits

    # ---- per-tile work -----------------------------------------------------
    pc = pc_ref[...]                                      # (TM, Dp), input dtype
    pcf = pc.astype(jnp.float32)
    pc_ssq = jnp.sum(pcf * pcf, axis=1, keepdims=True)    # exact f32 row sq-norms
    pc_scale = jax.lax.rsqrt(jnp.maximum(pc_ssq, eps2)) * inv_t   # 1/T folded in

    # Similarity block: stationary sd^T already lane-dense along B -> natural
    # (TM,Dp) x (Dp,B) MXU feed, f32 accumulation, HIGHEST precision for f32 inputs.
    raw = jax.lax.dot_general(
        pc, sd_t_ref[...],
        dimension_numbers=(((1,), (0,)), ((), ())),
        preferred_element_type=jnp.float32,
        precision=mxu_precision)                          # (TM, B) f32
    logits = raw * pc_scale * sd_inv_lane_ref[...]        # cos / T

    # Positive-pair (diagonal) logits: O(TM*D) elementwise dot with the matching
    # sd row tile — shared by both directions, no (TM,B) mask pass.
    sdrf = sd_row_ref[...].astype(jnp.float32)
    diag = (jnp.sum(pcf * sdrf, axis=1, keepdims=True)
            * pc_scale * sd_inv_row_ref[...])             # (TM, 1)
    diag_acc_ref[...] += jnp.sum(diag, axis=0, keepdims=True)

    if use_shared_exp:
        # Bounded logits (|cos| <= 1  =>  logits <= 1/T): one exp for BOTH directions.
        e = jnp.exp(logits - inv_t)                       # (TM, B), every entry <= ~1
        row_lse = inv_t + jnp.log(jnp.sum(e, axis=1, keepdims=True))
        row_acc_ref[...] += jnp.sum(row_lse, axis=0, keepdims=True)
        col_s_ref[...] += jnp.sum(e, axis=0, keepdims=True)
    else:
        # Online-max fallback for very small temperatures (1/T > ~80).
        row_m = jnp.max(logits, axis=1, keepdims=True)
        row_lse = row_m + jnp.log(jnp.sum(jnp.exp(logits - row_m), axis=1, keepdims=True))
        row_acc_ref[...] += jnp.sum(row_lse, axis=0, keepdims=True)
        new_m = jnp.maximum(col_m_ref[...], jnp.max(logits, axis=0, keepdims=True))
        col_s_ref[...] = (col_s_ref[...] * jnp.exp(col_m_ref[...] - new_m)
                          + jnp.sum(jnp.exp(logits - new_m), axis=0, keepdims=True))
        col_m_ref[...] = new_m

    @pl.when(t == nt - 1)
    def _finalize():
        if use_shared_exp:
            col_lse = inv_t + jnp.log(col_s_ref[...])     # (1, B)
        else:
            col_lse = col_m_ref[...] + jnp.log(col_s_ref[...])
        # loss = (mean_i(row_lse_i - diag_i) + mean_j(col_lse_j - diag_j)) / 2
        total = (row_acc_ref[...] + jnp.sum(col_lse, axis=1, keepdims=True)
                 - 2.0 * diag_acc_ref[...])
        out_ref[...] = total * jnp.float32(0.5 / b)


def _vmem_capacity_bytes() -> int:
    try:
        return int(pltpu.get_tpu_info().vmem_capacity_bytes)
    except Exception:
        return 64 * 1024 * 1024   # conservative (v7x per-TC VMEM)


def _vmem_estimate(tm: int, batch: int, dp: int, itemsize: int) -> int:
    lanes_b = ((batch + 127) // 128) * 128
    est = 2 * tm * dp * itemsize          # pc row tiles (double-buffered)
    est += 2 * tm * dp * itemsize         # sd row tiles for diagonal (double-buffered)
    est += dp * lanes_b * itemsize        # resident sd^T (single-buffered)
    est += 8 * lanes_b * 4                # sd inv-norms, lane-oriented
    est += 2 * tm * 128 * 4               # sd inv-norm row tiles
    est += 5 * tm * lanes_b * 4           # live (TM, B) f32 temporaries (raw/logits/exp)
    est += 2 * 8 * lanes_b * 4 + 4096     # column accumulators + scalar scratch
    return est


def _pick_row_tile(batch: int, dp: int, itemsize: int, capacity: int) -> int:
    budget = int(0.8 * capacity)
    divisors = [tm for tm in (512, 256, 128, 64, 32, 16, 8) if batch % tm == 0]
    for tm in divisors:
        if _vmem_estimate(tm, batch, dp, itemsize) <= budget:
            return tm
    return divisors[-1] if divisors else batch


def infonce_loss(pc_feats, sd_feats, temperature: float = 0.07, row_block=None):
    """Pallas TPU implementation of InfoNCE_Loss.forward. Returns a scalar."""
    assert pc_feats.ndim == 2 and pc_feats.shape == sd_feats.shape
    sd_feats = sd_feats.astype(pc_feats.dtype)
    batch, dim = pc_feats.shape
    dtype = pc_feats.dtype
    itemsize = jnp.dtype(dtype).itemsize

    # Lane-dense feature dim: zero-pad D to a multiple of 128 (norms / dots unchanged).
    dp = max(128, ((dim + 127) // 128) * 128)
    if dp != dim:
        pc = jnp.pad(pc_feats, ((0, 0), (0, dp - dim)))
        sd = jnp.pad(sd_feats, ((0, 0), (0, dp - dim)))
    else:
        pc, sd = pc_feats, sd_feats

    # sd inverse norms once, in exact f32, outside the kernel; both orientations.
    sdf32 = sd.astype(jnp.float32)
    sd_inv = jax.lax.rsqrt(jnp.maximum(jnp.sum(sdf32 * sdf32, axis=1), 1e-24))
    sd_inv_lane = sd_inv.reshape(1, batch)
    sd_inv_row = sd_inv.reshape(batch, 1)
    sd_t = sd.T                          # (Dp, B): stationary MXU operand, lane-dense on B

    capacity = _vmem_capacity_bytes()
    if row_block is not None and batch % row_block == 0:
        tm = int(row_block)
    else:
        tm = _pick_row_tile(batch, dp, itemsize, capacity)
    grid = (batch // tm,)

    est = _vmem_estimate(tm, batch, dp, itemsize)
    vmem_limit = int(min(capacity, max(int(est * 1.25), 32 * 1024 * 1024)))

    inv_temp = 1.0 / float(temperature)
    use_shared_exp = inv_temp <= 80.0    # bounded-logit fast path (one shared exp)
    mxu_precision = (jax.lax.Precision.HIGHEST
                     if jnp.dtype(dtype) == jnp.float32 else None)

    kernel = functools.partial(_infonce_kernel, inv_temp=inv_temp,
                               use_shared_exp=use_shared_exp,
                               mxu_precision=mxu_precision)

    out = pl.pallas_call(
        kernel,
        out_shape=jax.ShapeDtypeStruct((1, 1), jnp.float32),
        grid_spec=pltpu.PrefetchScalarGridSpec(
            num_scalar_prefetch=0,
            grid=grid,
            in_specs=[
                pl.BlockSpec((tm, dp), lambda t: (t, 0)),        # pc row tile (pipelined)
                pl.BlockSpec((dp, batch), lambda t: (0, 0),      # resident sd^T, single buffer
                             pipeline_mode=pl.Buffered(1)),
                pl.BlockSpec((tm, dp), lambda t: (t, 0)),        # sd row tile (diagonal)
                pl.BlockSpec((1, batch), lambda t: (0, 0),       # sd inv-norm (1,B)
                             pipeline_mode=pl.Buffered(1)),
                pl.BlockSpec((tm, 1), lambda t: (t, 0)),         # sd inv-norm (B,1) tile
            ],
            out_specs=pl.BlockSpec((1, 1), lambda t: (0, 0)),
            scratch_shapes=[
                pltpu.VMEM((1, batch), jnp.float32),   # running column sum(exp)
                pltpu.VMEM((1, batch), jnp.float32),   # running column max (fallback path)
                pltpu.VMEM((1, 1), jnp.float32),       # sum of row logsumexp
                pltpu.VMEM((1, 1), jnp.float32),       # sum of diagonal logits
            ],
        ),
        compiler_params=pltpu.CompilerParams(
            dimension_semantics=("arbitrary",),
            vmem_limit_bytes=vmem_limit,
        ),
    )(pc, sd_t, sd, sd_inv_lane, sd_inv_row)
    return out[0, 0]


def infonce_loss_ref(pc_feats, sd_feats, temperature: float = 0.07):
    """Pure-JAX reference mirroring the PyTorch module."""
    eps = 1e-12
    pc = pc_feats.astype(jnp.float32)
    sd = sd_feats.astype(jnp.float32)
    pc = pc / jnp.maximum(jnp.linalg.norm(pc, axis=1, keepdims=True), eps)
    sd = sd / jnp.maximum(jnp.linalg.norm(sd, axis=1, keepdims=True), eps)
    pc_sd = (pc @ sd.T) / temperature
    sd_pc = (sd @ pc.T) / temperature
    mask = jnp.eye(pc_sd.shape[0], dtype=jnp.float32)

    def calc(lg):
        return -jnp.log(jnp.sum(jax.nn.softmax(lg, axis=1) * mask, axis=1))

    return (jnp.mean(calc(pc_sd)) + jnp.mean(calc(sd_pc))) / 2.0


if __name__ == "__main__":
    temperature = 0.07
    key = jax.random.PRNGKey(0)
    k1, k2, k3, k4 = jax.random.split(key, 4)

    # Case 1: single row tile (B=8, D=32; D lane-padded to 128 in the wrapper).
    pc_a = jax.random.normal(k1, (8, 32), dtype=jnp.float32)
    sd_a = jax.random.normal(k2, (8, 32), dtype=jnp.float32)
    loss_a = jax.block_until_ready(infonce_loss(pc_a, sd_a, temperature))
    ref_a = infonce_loss_ref(pc_a, sd_a, temperature)
    assert jnp.allclose(loss_a, ref_a, rtol=1e-3, atol=1e-3), (loss_a, ref_a)

    # Case 2: two row tiles (B=16, forced TM=8) exercising the cross-tile column
    # accumulation, the streamed diagonal tiles and the final reduction.
    pc_b = jax.random.normal(k3, (16, 32), dtype=jnp.float32)
    sd_b = jax.random.normal(k4, (16, 32), dtype=jnp.float32)
    loss_b = jax.block_until_ready(infonce_loss(pc_b, sd_b, temperature, row_block=8))
    ref_b = infonce_loss_ref(pc_b, sd_b, temperature)
    assert jnp.allclose(loss_b, ref_b, rtol=1e-3, atol=1e-3), (loss_b, ref_b)

    print("KERNEL_OK")
</pallas_src>

<mosaic_0001>
module attributes {stable_mosaic.version = 11 : i64} {
  func.func @_infonce_kernel(%arg0: i32, %arg1: memref<8x128xf32, #tpu.memory_space<vmem>>, %arg2: memref<128x8xf32, #tpu.memory_space<vmem>>, %arg3: memref<8x128xf32, #tpu.memory_space<vmem>>, %arg4: memref<1x8xf32, #tpu.memory_space<vmem>>, %arg5: memref<8x1xf32, #tpu.memory_space<vmem>>, %arg6: memref<1x1xf32, #tpu.memory_space<vmem>>, %arg7: memref<1x8xf32, #tpu.memory_space<vmem>>, %arg8: memref<1x8xf32, #tpu.memory_space<vmem>>, %arg9: memref<1x1xf32, #tpu.memory_space<vmem>>, %arg10: memref<1x1xf32, #tpu.memory_space<vmem>>) attributes {dimension_semantics = [#tpu.dimension_semantics<arbitrary>], iteration_bounds = array<i64: 1>, scalar_prefetch = 0 : i64, scratch_operands = 4 : i64, tpu.core_type = #tpu.core_type<tc>, window_params = [{transform_indices = @transform_0, window_bounds = array<i64: 8, 128>}, {pipeline_mode = #tpu.pipeline_mode<synchronous>, transform_indices = @transform_1, window_bounds = array<i64: 128, 8>}, {transform_indices = @transform_2, window_bounds = array<i64: 8, 128>}, {pipeline_mode = #tpu.pipeline_mode<synchronous>, transform_indices = @transform_3, window_bounds = array<i64: 1, 8>}, {transform_indices = @transform_4, window_bounds = array<i64: 8, 1>}, {pipeline_mode = #tpu.pipeline_mode<synchronous>, transform_indices = @transform_5, window_bounds = array<i64: 1, 1>}]} {
    %c0_i32 = arith.constant 0 : i32
    %0 = arith.cmpi eq, %arg0, %c0_i32 : i32
    %1 = arith.extui %0 : i1 to i32
    %c0_i32_0 = arith.constant 0 : i32
    %2 = arith.cmpi ne, %1, %c0_i32_0 : i32
    scf.if %2 {
      %cst_35 = arith.constant 0.000000e+00 : f32
      %52 = vector.broadcast %cst_35 : f32 to vector<1x8xf32>
      %c0_36 = arith.constant 0 : index
      %c0_37 = arith.constant 0 : index
      %53 = vector.load %arg7[%c0_36, %c0_37] : memref<1x8xf32, #tpu.memory_space<vmem>>, vector<1x8xf32>
      tpu.vector_store %arg7[%c0_36, %c0_37], %52 {strides = array<i32>} : memref<1x8xf32, #tpu.memory_space<vmem>>, vector<1x8xf32>,
      %cst_38 = arith.constant 0xFF800000 : f32
      %54 = vector.broadcast %cst_38 : f32 to vector<1x8xf32>
      %c0_39 = arith.constant 0 : index
      %c0_40 = arith.constant 0 : index
      %55 = vector.load %arg8[%c0_39, %c0_40] : memref<1x8xf32, #tpu.memory_space<vmem>>, vector<1x8xf32>
      tpu.vector_store %arg8[%c0_39, %c0_40], %54 {strides = array<i32>} : memref<1x8xf32, #tpu.memory_space<vmem>>, vector<1x8xf32>,
      %cst_41 = arith.constant 0.000000e+00 : f32
      %56 = vector.broadcast %cst_41 : f32 to vector<1x1xf32>
      %c0_42 = arith.constant 0 : index
      %c0_43 = arith.constant 0 : index
      %57 = vector.load %arg9[%c0_42, %c0_43] : memref<1x1xf32, #tpu.memory_space<vmem>>, vector<1x1xf32>
      tpu.vector_store %arg9[%c0_42, %c0_43], %56 {strides = array<i32>} : memref<1x1xf32, #tpu.memory_space<vmem>>, vector<1x1xf32>,
      %cst_44 = arith.constant 0.000000e+00 : f32
      %58 = vector.broadcast %cst_44 : f32 to vector<1x1xf32>
      %c0_45 = arith.constant 0 : index
      %c0_46 = arith.constant 0 : index
      %59 = vector.load %arg10[%c0_45, %c0_46] : memref<1x1xf32, #tpu.memory_space<vmem>>, vector<1x1xf32>
      tpu.vector_store %arg10[%c0_45, %c0_46], %58 {strides = array<i32>} : memref<1x1xf32, #tpu.memory_space<vmem>>, vector<1x1xf32>,
    } else {
    }
    %c0 = arith.constant 0 : index
    %c0_1 = arith.constant 0 : index
    %3 = vector.load %arg1[%c0, %c0_1] : memref<8x128xf32, #tpu.memory_space<vmem>>, vector<8x128xf32>
    %4 = arith.mulf %3, %3 : vector<8x128xf32>
    %cst = arith.constant dense<0.000000e+00> : vector<8xf32>
    %5 = vector.multi_reduction <add>, %4, %cst [1] : vector<8x128xf32> to vector<8xf32>
    %6 = vector.shape_cast %5 : vector<8xf32> to vector<8x1xf32>
    %cst_2 = arith.constant 1.000000e-24 : f32
    %7 = vector.broadcast %cst_2 : f32 to vector<8x1xf32>
    %8 = arith.maximumf %6, %7 : vector<8x1xf32>
    %9 = math.rsqrt %8 : vector<8x1xf32>
    %cst_3 = arith.constant 14.2857141 : f32
    %10 = vector.broadcast %cst_3 : f32 to vector<8x1xf32>
    %11 = arith.mulf %9, %10 : vector<8x1xf32>
    %c0_4 = arith.constant 0 : index
    %c0_5 = arith.constant 0 : index
    %12 = vector.load %arg2[%c0_4, %c0_5] : memref<128x8xf32, #tpu.memory_space<vmem>>, vector<128x8xf32>
    %cst_6 = arith.constant dense<0.000000e+00> : vector<8x8xf32>
    %13 = tpu.matmul %3, %12, %cst_6 {dimension_numbers = #tpu.dot_dimension_numbers<[1], [0], [0], [1], [0, 0, 1, 1], [], []>, precision = #tpu.contract_precision<fp32>} : vector<8x128xf32>, vector<128x8xf32>, vector<8x8xf32> -> vector<8x8xf32>
    %14 = vector.broadcast %11 : vector<8x1xf32> to vector<8x8xf32>
    %15 = arith.mulf %13, %14 : vector<8x8xf32>
    %c0_7 = arith.constant 0 : index
    %c0_8 = arith.constant 0 : index
    %16 = vector.load %arg4[%c0_7, %c0_8] : memref<1x8xf32, #tpu.memory_space<vmem>>, vector<1x8xf32>
    %17 = vector.broadcast %16 : vector<1x8xf32> to vector<8x8xf32>
    %18 = arith.mulf %15, %17 : vector<8x8xf32>
    %c0_9 = arith.constant 0 : index
    %c0_10 = arith.constant 0 : index
    %19 = vector.load %arg3[%c0_9, %c0_10] : memref<8x128xf32, #tpu.memory_space<vmem>>, vector<8x128xf32>
    %20 = arith.mulf %3, %19 : vector<8x128xf32>
    %cst_11 = arith.constant dense<0.000000e+00> : vector<8xf32>
    %21 = vector.multi_reduction <add>, %20, %cst_11 [1] : vector<8x128xf32> to vector<8xf32>
    %22 = vector.shape_cast %21 : vector<8xf32> to vector<8x1xf32>
    %23 = arith.mulf %22, %11 : vector<8x1xf32>
    %c0_12 = arith.constant 0 : index
    %c0_13 = arith.constant 0 : index
    %24 = vector.load %arg5[%c0_12, %c0_13] : memref<8x1xf32, #tpu.memory_space<vmem>>, vector<8x1xf32>
    %25 = arith.mulf %23, %24 : vector<8x1xf32>
    %c0_14 = arith.constant 0 : index
    %c0_15 = arith.constant 0 : index
    %26 = vector.load %arg10[%c0_14, %c0_15] : memref<1x1xf32, #tpu.memory_space<vmem>>, vector<1x1xf32>
    %cst_16 = arith.constant dense<0.000000e+00> : vector<1xf32>
    %27 = vector.multi_reduction <add>, %25, %cst_16 [0] : vector<8x1xf32> to vector<1xf32>
    %28 = vector.shape_cast %27 : vector<1xf32> to vector<1x1xf32>
    %29 = arith.addf %26, %28 : vector<1x1xf32>
    %c0_17 = arith.constant 0 : index
    %c0_18 = arith.constant 0 : index
    %30 = vector.load %arg10[%c0_17, %c0_18] : memref<1x1xf32, #tpu.memory_space<vmem>>, vector<1x1xf32>
    tpu.vector_store %arg10[%c0_17, %c0_18], %29 {strides = array<i32>} : memref<1x1xf32, #tpu.memory_space<vmem>>, vector<1x1xf32>,
    %cst_19 = arith.constant 14.2857141 : f32
    %31 = vector.broadcast %cst_19 : f32 to vector<8x8xf32>
    %32 = arith.subf %18, %31 : vector<8x8xf32>
    %33 = math.exp %32 : vector<8x8xf32>
    %cst_20 = arith.constant dense<0.000000e+00> : vector<8xf32>
    %34 = vector.multi_reduction <add>, %33, %cst_20 [1] : vector<8x8xf32> to vector<8xf32>
    %35 = vector.shape_cast %34 : vector<8xf32> to vector<8x1xf32>
    %36 = math.log %35 : vector<8x1xf32>
    %cst_21 = arith.constant 14.2857141 : f32
    %37 = vector.broadcast %cst_21 : f32 to vector<8x1xf32>
    %38 = arith.addf %37, %36 : vector<8x1xf32>
    %c0_22 = arith.constant 0 : index
    %c0_23 = arith.constant 0 : index
    %39 = vector.load %arg9[%c0_22, %c0_23] : memref<1x1xf32, #tpu.memory_space<vmem>>, vector<1x1xf32>
    %cst_24 = arith.constant dense<0.000000e+00> : vector<1xf32>
    %40 = vector.multi_reduction <add>, %38, %cst_24 [0] : vector<8x1xf32> to vector<1xf32>
    %41 = vector.shape_cast %40 : vector<1xf32> to vector<1x1xf32>
    %42 = arith.addf %39, %41 : vector<1x1xf32>
    %c0_25 = arith.constant 0 : index
    %c0_26 = arith.constant 0 : index
    %43 = vector.load %arg9[%c0_25, %c0_26] : memref<1x1xf32, #tpu.memory_space<vmem>>, vector<1x1xf32>
    tpu.vector_store %arg9[%c0_25, %c0_26], %42 {strides = array<i32>} : memref<1x1xf32, #tpu.memory_space<vmem>>, vector<1x1xf32>,
    %c0_27 = arith.constant 0 : index
    %c0_28 = arith.constant 0 : index
    %44 = vector.load %arg7[%c0_27, %c0_28] : memref<1x8xf32, #tpu.memory_space<vmem>>, vector<1x8xf32>
    %cst_29 = arith.constant dense<0.000000e+00> : vector<8xf32>
    %45 = vector.multi_reduction <add>, %33, %cst_29 [0] : vector<8x8xf32> to vector<8xf32>
    %46 = vector.shape_cast %45 : vector<8xf32> to vector<1x8xf32>
    %47 = arith.addf %44, %46 : vector<1x8xf32>
    %c0_30 = arith.constant 0 : index
    %c0_31 = arith.constant 0 : index
    %48 = vector.load %arg7[%c0_30, %c0_31] : memref<1x8xf32, #tpu.memory_space<vmem>>, vector<1x8xf32>
    tpu.vector_store %arg7[%c0_30, %c0_31], %47 {strides = array<i32>} : memref<1x8xf32, #tpu.memory_space<vmem>>, vector<1x8xf32>,
    %c0_i32_32 = arith.constant 0 : i32
    %49 = arith.cmpi eq, %arg0, %c0_i32_32 : i32
    %50 = arith.extui %49 : i1 to i32
    %cst_33 = arith.constant 14.2857141 : f32
    %c0_i32_34 = arith.constant 0 : i32
    %51 = arith.cmpi ne, %50, %c0_i32_34 : i32
    scf.if %51 {
      %c0_35 = arith.constant 0 : index
      %c0_36 = arith.constant 0 : index
      %52 = vector.load %arg7[%c0_35, %c0_36] : memref<1x8xf32, #tpu.memory_space<vmem>>, vector<1x8xf32>
      %53 = math.log %52 : vector<1x8xf32>
      %54 = vector.broadcast %cst_33 : f32 to vector<1x8xf32>
      %55 = arith.addf %54, %53 : vector<1x8xf32>
      %c0_37 = arith.constant 0 : index
      %c0_38 = arith.constant 0 : index
      %56 = vector.load %arg9[%c0_37, %c0_38] : memref<1x1xf32, #tpu.memory_space<vmem>>, vector<1x1xf32>
      %cst_39 = arith.constant dense<0.000000e+00> : vector<1xf32>
      %57 = vector.multi_reduction <add>, %55, %cst_39 [1] : vector<1x8xf32> to vector<1xf32>
      %58 = vector.shape_cast %57 : vector<1xf32> to vector<1x1xf32>
      %59 = arith.addf %56, %58 : vector<1x1xf32>
      %c0_40 = arith.constant 0 : index
      %c0_41 = arith.constant 0 : index
      %60 = vector.load %arg10[%c0_40, %c0_41] : memref<1x1xf32, #tpu.memory_space<vmem>>, vector<1x1xf32>
      %cst_42 = arith.constant 2.000000e+00 : f32
      %61 = vector.broadcast %cst_42 : f32 to vector<1x1xf32>
      %62 = arith.mulf %61, %60 : vector<1x1xf32>
      %63 = arith.subf %59, %62 : vector<1x1xf32>
      %cst_43 = arith.constant 6.250000e-02 : f32
      %64 = vector.broadcast %cst_43 : f32 to vector<1x1xf32>
      %65 = arith.mulf %63, %64 : vector<1x1xf32>
      %c0_44 = arith.constant 0 : index
      %c0_45 = arith.constant 0 : index
      %66 = vector.load %arg6[%c0_44, %c0_45] : memref<1x1xf32, #tpu.memory_space<vmem>>, vector<1x1xf32>
      tpu.vector_store %arg6[%c0_44, %c0_45], %65 {strides = array<i32>} : memref<1x1xf32, #tpu.memory_space<vmem>>, vector<1x1xf32>,
    } else {
    }
    return
  }
  func.func @transform_0(%arg0: i32) -> (i32, i32) {
    %c0_i32 = arith.constant 0 : i32
    %c0_i32_0 = arith.constant 0 : i32
    return %arg0, %c0_i32 : i32, i32
  }
  func.func @transform_1(%arg0: i32) -> (i32, i32) {
    %c0_i32 = arith.constant 0 : i32
    %c0_i32_0 = arith.constant 0 : i32
    %c0_i32_1 = arith.constant 0 : i32
    return %c0_i32, %c0_i32_0 : i32, i32
  }
  func.func @transform_2(%arg0: i32) -> (i32, i32) {
    %c0_i32 = arith.constant 0 : i32
    %c0_i32_0 = arith.constant 0 : i32
    return %arg0, %c0_i32 : i32, i32
  }
  func.func @transform_3(%arg0: i32) -> (i32, i32) {
    %c0_i32 = arith.constant 0 : i32
    %c0_i32_0 = arith.constant 0 : i32
    %c0_i32_1 = arith.constant 0 : i32
    return %c0_i32, %c0_i32_0 : i32, i32
  }
  func.func @transform_4(%arg0: i32) -> (i32, i32) {
    %c0_i32 = arith.constant 0 : i32
    %c0_i32_0 = arith.constant 0 : i32
    return %arg0, %c0_i32 : i32, i32
  }
  func.func @transform_5(%arg0: i32) -> (i32, i32) {
    %c0_i32 = arith.constant 0 : i32
    %c0_i32_0 = arith.constant 0 : i32
    %c0_i32_1 = arith.constant 0 : i32
    return %c0_i32, %c0_i32_0 : i32, i32
  }
}

</mosaic_0001>

<bundles_post_ra>
// kernel: tpu_custom_call.1
= control target key start
LH: loop header
LB: loop body
LE: loop exit
PB: predicated region body
PF: predicated region fallthrough
CT: control target
= control target key end

     0   :  { %v1287_v3 = vmov 0.0|0.0   ;;  %vm1288_vm0 = vmmov 0   ;;  %v1289_v11 = vmov 0.0   ;;  %s1658_s0 = inlined_call_operand.vmem [shape: f32[8,128], index: 0, kind: input, shape index: {}]   ;;  %s1659_s1 = inlined_call_operand.vmem [shape: f32[128,8], index: 1, kind: input, shape index: {}]   ;;  %s1660_s2 = inlined_call_operand.vmem [shape: f32[8,128], index: 2, kind: input, shape index: {}]   ;;  %s1661_s3 = inlined_call_operand.vmem [shape: f32[1,8], index: 3, kind: input, shape index: {}]   ;;  %s1662_s4 = inlined_call_operand.vmem [shape: f32[8,1], index: 4, kind: input, shape index: {}]   ;;  %s1663_s5 = inlined_call_operand.hbm [shape: f32[1,1], index: 5, kind: output, shape index: {}]  }
   0x1   :  { %v38_v0 = vld [vmem:[%s1659_s1] sm:$0xff]  ;;  %v39_v1 = vld [vmem:[%s1659_s1 + $0x8] sm:$0xff]  ;;  %v40_v2 = vld [vmem:[%s1659_s1 + $0x10] sm:$0xff]  ;;  %1097 = vmatprep.subr.bf16.mxu1 %v1287_v3  ;;  %1169 = vmatprep.subr.bf16.mxu0 %v1287_v3 }
   0x2   :  { %v55_v4 = vand.u32 4294901760, %v38_v0  ;;  %v58_v5 = vand.u32 4294901760, %v39_v1  ;;  %v41_v6 = vld [vmem:[%s1659_s1 + $0x18] sm:$0xff]  ;;  %v61_v7 = vand.u32 4294901760, %v40_v2  ;;  %v42_v9 = vld [vmem:[%s1659_s1 + $0x20] sm:$0xff]  ;;  %v43_v10 = vld [vmem:[%s1659_s1 + $0x28] sm:$0xff]  ;;  %919 = vmatprep.mubr.msk.f32.mxu1 %vm1288_vm0, %v1289_v11  ;;  %1024 = vmatprep.mubr.msk.f32.mxu0 %vm1288_vm0, %v1289_v11 }
   0x3   :  { %v64_v8 = vand.u32 4294901760, %v41_v6  ;;  %v67_v14 = vand.u32 4294901760, %v42_v9  ;;  %v70_v15 = vand.u32 4294901760, %v43_v10  ;;  %v44_v16 = vld [vmem:[%s1659_s1 + $0x30] sm:$0xff]  ;;  %v45_v17 = vld [vmem:[%s1659_s1 + $0x38] sm:$0xff] }
   0x4   :  { %v1345_v12 = vpack.c.bf16 %v58_v5, %v55_v4 }
   0x5   :  { %v1349_v13 = vpack.c.bf16 %v64_v8, %v61_v7 }
   0x6   :  { %1099 = vmatpush3.bf16.msra.mxu1 %v1345_v12  ;;  %1171 = vmatpush3.bf16.msra.mxu0 %v1345_v12 }
   0x7   :  { %1100 = vmatprep.subr.bf16.mxu1 %v1287_v3  ;;  %1172 = vmatprep.subr.bf16.mxu0 %v1287_v3 }
   0x8   :  { %10 = vsyncpa [#allocation7], 0  ;;  %v1361_v18 = vpack.c.bf16 %v70_v15, %v67_v14  ;;  %v73_v19 = vand.u32 4294901760, %v44_v16  ;;  %v76_v20 = vand.u32 4294901760, %v45_v17  ;;  %v1368_v21 = vld [vmem:[%s1659_s1 + $0x40] sm:$0xff]  ;;  %v1373_v22 = vld [vmem:[%s1659_s1 + $0x48] sm:$0xff]  ;;  %v1398_v29 = vsub.f32 %v38_v0, %v55_v4 }
   0x9   :  { %v79_v24 = vand.u32 4294901760, %v1368_v21  ;;  %v82_v25 = vand.u32 4294901760, %v1373_v22  ;;  %v1384_v26 = vld [vmem:[%s1658_s0] sm:$0xff]  ;;  %v1391_v27 = vld [vmem:[%s1659_s1 + $0x50] sm:$0xff]  ;;  %v1396_v28 = vld [vmem:[%s1659_s1 + $0x58] sm:$0xff]  ;;  %v1403_v31 = vsub.f32 %v39_v1, %v58_v5  ;;  %v1423_v37 = vsub.f32 %v40_v2, %v61_v7 }
   0xa   :  { %1102 = vmatpush3.bf16.msra.mxu1 %v1349_v13  ;;  %1174 = vmatpush3.bf16.msra.mxu0 %v1349_v13  ;;  %v1377_v23 = vpack.c.bf16 %v76_v20, %v73_v19  ;;  %v1401_v30 = vand.u32 4294901760, %v1384_v26  ;;  %v85_v33 = vand.u32 4294901760, %v1391_v27  ;;  %v88_v34 = vand.u32 4294901760, %v1396_v28  ;;  %v1414_v35 = vld [vmem:[%s1659_s1 + $0x60] sm:$0xff]  ;;  %v1421_v36 = vld [vmem:[%s1659_s1 + $0x68] sm:$0xff]  ;;  %v1444_v43 = vld [vmem:[%s1659_s1 + $0x70] sm:$0xff] }
   0xb   :  { %1103 = vmatprep.subr.bf16.mxu1 %v1287_v3  ;;  %1175 = vmatprep.subr.bf16.mxu0 %v1287_v3  ;;  %v1407_v32 = vpack.c.bf16 %v82_v25, %v79_v24  ;;  %v1425_v38 = vsub.f32 %v41_v6, %v64_v8  ;;  %v91_v39 = vand.u32 4294901760, %v1414_v35  ;;  %v94_v42 = vand.u32 4294901760, %v1421_v36  ;;  %v1449_v44 = vld [vmem:[%s1659_s1 + $0x78] sm:$0xff]  ;;  %v704_v63 = vld [vmem:[%s1660_s2] sm:$0xff] }
   0xc   :  { %v1430_v40 = vsub.f32 %v1384_v26, %v1401_v30  ;;  %v1438_v41 = vpack.c.bf16 %v88_v34, %v85_v33  ;;  %v148_v45 = vand.u32 4294901760, %v1398_v29  ;;  %v155_v46 = vand.u32 4294901760, %v1403_v31 }
   0xd   :  { %v1455_v47 = vsub.f32 %v42_v9, %v67_v14  ;;  %v1457_v48 = vsub.f32 %v43_v10, %v70_v15  ;;  %v97_v49 = vand.u32 4294901760, %v1444_v43  ;;  %v100_v50 = vand.u32 4294901760, %v1449_v44 }
   0xe   :  { %1105 = vmatpush3.bf16.msra.mxu1 %v1361_v18  ;;  %1177 = vmatpush3.bf16.msra.mxu0 %v1361_v18  ;;  %v137_v51 = vand.u32 4294901760, %v1430_v40  ;;  %v162_v52 = vand.u32 4294901760, %v1423_v37  ;;  %v1469_v53 = vpack.c.bf16 %v94_v42, %v91_v39  ;;  %v149_v54 = vsub.f32 %v1398_v29, %v148_v45 }
   0xf   :  { %1106 = vmatprep.subr.bf16.mxu1 %v1287_v3  ;;  %1178 = vmatprep.subr.bf16.mxu0 %v1287_v3  ;;  %v156_v55 = vsub.f32 %v1403_v31, %v155_v46  ;;  %v169_v56 = vand.u32 4294901760, %v1425_v38  ;;  %v1476_v57 = vsub.f32 %v44_v16, %v73_v19  ;;  %v1478_v58 = vsub.f32 %v45_v17, %v76_v20 }
  0x10   :  { %v138_v59 = vsub.f32 %v1430_v40, %v137_v51  ;;  %v163_v60 = vsub.f32 %v1423_v37, %v162_v52  ;;  %v176_v61 = vand.u32 4294901760, %v1455_v47  ;;  %v183_v62 = vand.u32 4294901760, %v1457_v48 }
  0x11   :  { %v1493_v0 = vpack.c.bf16 %v100_v50, %v97_v49  ;;  %v150_v1 = vand.u32 4294901760, %v149_v54  ;;  %v157_v2 = vand.u32 4294901760, %v156_v55  ;;  %v170_v4 = vsub.f32 %v1425_v38, %v169_v56 }
  0x12   :  { %1108 = vmatpush3.bf16.msra.mxu1 %v1377_v23  ;;  %1180 = vmatpush3.bf16.msra.mxu0 %v1377_v23  ;;  %v1497_v5 = vsub.f32 %v1368_v21, %v79_v24  ;;  %v1502_v6 = vsub.f32 %v1373_v22, %v82_v25  ;;  %v1194_v7 = vpack.c.bf16 %v155_v46, %v148_v45  ;;  %v139_v10 = vand.u32 4294901760, %v138_v59 }
  0x13   :  { %1109 = vmatprep.subr.bf16.mxu1 %v1287_v3  ;;  %1181 = vmatprep.subr.bf16.mxu0 %v1287_v3  ;;  %v32_v8 = vmul.f32 %v1384_v26, %v1384_v26  ;;  %v705_v9 = vmul.f32 %v704_v63, %v1384_v26  ;;  %v164_v14 = vand.u32 4294901760, %v163_v60  ;;  %v177_v15 = vsub.f32 %v1455_v47, %v176_v61 }
  0x14   :  { %v184_v16 = vsub.f32 %v1457_v48, %v183_v62  ;;  %v1122_v17 = vpack.c.bf16 %v157_v2, %v150_v1  ;;  %v171_v19 = vand.u32 4294901760, %v170_v4  ;;  %v190_v20 = vand.u32 4294901760, %v1476_v57 }
  0x15   :  { %v197_v21 = vand.u32 4294901760, %v1478_v58  ;;  %v1518_v22 = vsub.f32 %v1391_v27, %v85_v33  ;;  %v1523_v24 = vsub.f32 %v1396_v28, %v88_v34  ;;  %33 = vadd.xlane.f32.xlu0 %v32_v8  ;;  %706 = vadd.xlane.f32.xlu1 %v705_v9  ;;  %v1197_v25 = vpack.c.bf16 %v169_v56, %v162_v52 }
  0x16   :  { %1111 = vmatpush3.bf16.msra.mxu1 %v1407_v32  ;;  %1183 = vmatpush3.bf16.msra.mxu0 %v1407_v32  ;;  %v178_v26 = vand.u32 4294901760, %v177_v15  ;;  %v185_v45 = vand.u32 4294901760, %v184_v16  ;;  %v204_v46 = vand.u32 4294901760, %v1497_v5  ;;  %v1125_v54 = vpack.c.bf16 %v171_v19, %v164_v14 }
  0x17   :  { %1112 = vmatprep.subr.bf16.mxu1 %v1287_v3  ;;  %1184 = vmatprep.subr.bf16.mxu0 %v1287_v3  ;;  %v191_v27 = vsub.f32 %v1476_v57, %v190_v20  ;;  %v198_v33 = vsub.f32 %v1478_v58, %v197_v21  ;;  %v211_v55 = vand.u32 4294901760, %v1502_v6  ;;  %v1534_v28 = vsub.f32 %v1414_v35, %v91_v39 }
  0x18   :  { %v1539_v34 = vsub.f32 %v1421_v36, %v94_v42  ;;  %v1200_v52 = vpack.c.bf16 %v183_v62, %v176_v61  ;;  %v205_v56 = vsub.f32 %v1497_v5, %v204_v46  ;;  %v218_v59 = vand.u32 4294901760, %v1518_v22 }
  0x19   :  { %v192_v35 = vand.u32 4294901760, %v191_v27  ;;  %v199_v39 = vand.u32 4294901760, %v198_v33  ;;  %v212_v60 = vsub.f32 %v1502_v6, %v211_v55  ;;  %v225_v36 = vand.u32 4294901760, %v1523_v24 }
  0x1a   :  { %1114 = vmatpush3.bf16.msra.mxu1 %v1438_v41  ;;  %1186 = vmatpush3.bf16.msra.mxu0 %v1438_v41  ;;  %v1554_v42 = vsub.f32 %v1444_v43, %v97_v49  ;;  %v1559_v61 = vsub.f32 %v1449_v44, %v100_v50  ;;  %v1203_v62 = vpack.c.bf16 %v197_v21, %v190_v20  ;;  %v206_v63 = vand.u32 4294901760, %v205_v56 }
  0x1b   :  { %1115 = vmatprep.subr.bf16.mxu1 %v1287_v3  ;;  %1187 = vmatprep.subr.bf16.mxu0 %v1287_v3  ;;  %v219_v1 = vsub.f32 %v1518_v22, %v218_v59  ;;  %v232_v2 = vand.u32 4294901760, %v1534_v28  ;;  %v1131_v4 = vpack.c.bf16 %v199_v39, %v192_v35  ;;  %v226_v8 = vsub.f32 %v1523_v24, %v225_v36  ;;  %v783_v39 = vld [vmem:[%s1661_s3] ss:$0 sm:$0xff]  ;;  %s1290_s3 = smov [#allocation6]  }
  0x1c   :  { %v239_v43 = vand.u32 4294901760, %v1539_v34  ;;  %v1206_v44 = vpack.c.bf16 %v211_v55, %v204_v46  ;;  %v246_v9 = vand.u32 4294901760, %v1554_v42  ;;  %v253_v16 = vand.u32 4294901760, %v1559_v61  ;;  %s775_s29 = sshll.u32 %s1290_s3, 4  ;;  %s776_s29 = int_to_ptr.vmem [resolvable:$true] %s775_s29 }
  0x1d   :  { %v220_v49 = vand.u32 4294901760, %v219_v1  ;;  %v233_v50 = vsub.f32 %v1534_v28, %v232_v2  ;;  %v227_v14 = vand.u32 4294901760, %v226_v8  ;;  %vm28_vm1 = vcmask 0   ;;  %s1263_s30 = scalar_lea.vmem %s776_s29, 16  ;;  %s1267_s6 = scalar_lea.vmem %s776_s29, 32 }
  0x1e   :  { %1117 = vmatpush3.bf16.msra.mxu1 %v1469_v53  ;;  %1189 = vmatpush3.bf16.msra.mxu0 %v1469_v53  ;;  %v240_v15 = vsub.f32 %v1539_v34, %v239_v43  ;;  %v1212_v46 = vpack.c.bf16 %v239_v43, %v232_v2  ;;  %v1215_v55 = vpack.c.bf16 %v253_v16, %v246_v9  ;;  %vm712_vm2 = vcmask 7168   ;;  %p1264_p0 = scmp.ne.s32.totalorder %s776_s29, %s1263_s30  ;;  %p1268_p1 = scmp.lt.s32.totalorder %s776_s29, %s776_s29 }
  0x1f   :  { %1118 = vmatprep.subr.bf16.mxu1 %v1287_v3  ;;  %1190 = vmatprep.subr.bf16.mxu0 %v1287_v3  ;;  %v234_v19 = vand.u32 4294901760, %v233_v50  ;;  %v1137_v20 = vpack.c.bf16 %v227_v14, %v220_v49  ;;  %29 = vst.msk [vmem:[#allocation4] sm:$0x1] %vm28_vm1, %v1289_v11  ;;  %30 = vst.msk [vmem:[#allocation5] sm:$0x1] %vm28_vm1, %v1289_v11  ;;  %vm25_vm3 = vcmask 57344   ;;  %p1269_p2 = scmp.lt.s32.totalorder %s1267_s6, %s1263_s30 }
  0x20   :  { %v241_v21 = vand.u32 4294901760, %v240_v15  ;;  %26 = vst.msk [vmem:[#allocation2] sm:$0x1] %vm25_vm3, %v1289_v11  ;;  %vm726_vm4 = vcmask 64512  }
  0x21   :  { %p1270_p3 = por %p1269_p2, %p1268_p1 }
  0x22   :  { %1120 = vmatpush3.bf16.msra.mxu1 %v1493_v0  ;;  %1192 = vmatpush3.bf16.msra.mxu0 %v1493_v0 }
  0x23   :  { %1121 = vmatprep.subr.bf16.mxu1 %v1287_v3  ;;  %1193 = vmatprep.subr.bf16.mxu0 %v1287_v3  ;;  %p1271_p4 = pnand %p1270_p3, %p1264_p0 }
  0x25   :  { %920 = vmatmul.mubr.f32.vlgmr.msra.gmra.mrb[0].mxu1 %v139_v10  ;;  %1025 = vmatmul.mubr.f32.vlgmr.msra.gmra.mrb[0].mxu0 %v137_v51  ;;  %v1128_v51 = vpack.c.bf16 %v185_v45, %v178_v26  ;;  %v254_v26 = vsub.f32 %v1559_v61, %v253_v16  ;;  %v1140_v45 = vpack.c.bf16 %v241_v21, %v234_v19 }
  0x26   :  { %1123 = vmatpush3.bf16.msra.mxu1 %v1122_v17  ;;  %1195 = vmatpush3.bf16.msra.mxu0 %v1194_v7  ;;  %v213_v7 = vand.u32 4294901760, %v212_v60  ;;  %v1209_v17 = vpack.c.bf16 %v225_v36, %v218_v59 }
  0x27   :  { %1124 = vmatprep.subr.bf16.mxu1 %v1287_v3  ;;  %1196 = vmatprep.subr.bf16.mxu0 %v1287_v3  ;;  %v255_v27 = vand.u32 4294901760, %v254_v26  ;;  %v742_v8 = vld [vmem:[#allocation2] sm:$0x1] }
  0x28   :  { %954 = vmatprep.mubr.msk.f32.mxu1 %vm1288_vm0, %v1289_v11  ;;  %1059 = vmatprep.mubr.msk.f32.mxu0 %vm1288_vm0, %v1289_v11  ;;  %v1134_v10 = vpack.c.bf16 %v213_v7, %v206_v63 }
  0x2a   :  { %1126 = vmatpush3.bf16.msra.mxu1 %v1125_v54  ;;  %1198 = vmatpush3.bf16.msra.mxu0 %v1197_v25  ;;  %v247_v25 = vsub.f32 %v1554_v42, %v246_v9 }
  0x2b   :  { %1127 = vmatprep.subr.bf16.mxu1 %v1287_v3  ;;  %1199 = vmatprep.subr.bf16.mxu0 %v1287_v3 }
  0x2c   :  { %v248_v54 = vand.u32 4294901760, %v247_v25 }
  0x2e   :  { %1129 = vmatpush3.bf16.msra.mxu1 %v1128_v51  ;;  %1201 = vmatpush3.bf16.msra.mxu0 %v1200_v52  ;;  %v1143_v33 = vpack.c.bf16 %v255_v27, %v248_v54  ;;  %v1146_v51 = vpack.c.bf16 %v1403_v31, %v1398_v29  ;;  %v1149_v52 = vpack.c.bf16 %v1425_v38, %v1423_v37 }
  0x2f   :  { %1130 = vmatprep.subr.bf16.mxu1 %v1287_v3  ;;  %1202 = vmatprep.subr.bf16.mxu0 %v1287_v3  ;;  %v1152_v29 = vpack.c.bf16 %v1457_v48, %v1455_v47  ;;  %v1167_v31 = vpack.c.bf16 %v1559_v61, %v1554_v42  ;;  %v709_v47 = vld [vmem:[%s1662_s4] sm:$0xff] }
  0x32   :  { %1132 = vmatpush3.bf16.msra.mxu1 %v1131_v4  ;;  %1204 = vmatpush3.bf16.msra.mxu0 %v1203_v62 }
  0x33   :  { %1133 = vmatprep.subr.bf16.mxu1 %v1287_v3  ;;  %1205 = vmatprep.subr.bf16.mxu0 %v1287_v3 }
  0x36   :  { %1135 = vmatpush3.bf16.msra.mxu1 %v1134_v10  ;;  %1207 = vmatpush3.bf16.msra.mxu0 %v1206_v44 }
  0x37   :  { %1136 = vmatprep.subr.bf16.mxu1 %v1287_v3  ;;  %1208 = vmatprep.subr.bf16.mxu0 %v1287_v3 }
  0x3a   :  { %1138 = vmatpush3.bf16.msra.mxu1 %v1137_v20  ;;  %1210 = vmatpush3.bf16.msra.mxu0 %v1209_v17 }
  0x3b   :  { %1139 = vmatprep.subr.bf16.mxu1 %v1287_v3  ;;  %1211 = vmatprep.subr.bf16.mxu0 %v1287_v3 }
  0x3e   :  { %1141 = vmatpush3.bf16.msra.mxu1 %v1140_v45  ;;  %1213 = vmatpush3.bf16.msra.mxu0 %v1212_v46  ;;  %v733_v46 = vld [vmem:[#allocation4] sm:$0x1] }
  0x3f   :  { %1142 = vmatprep.subr.bf16.mxu1 %v1287_v3  ;;  %1214 = vmatprep.subr.bf16.mxu0 %v1287_v3 }
  0x42   :  { %1144 = vmatpush3.bf16.msra.mxu1 %v1143_v33  ;;  %1216 = vmatpush3.bf16.msra.mxu0 %v1215_v55 }
  0x43   :  { %1145 = vmatprep.subr.bf16.mxu1 %v1287_v3  ;;  %1217 = vmatprep.subr.bf16.mxu0 %v1287_v3 }
  0x45   :  { %955 = vmatmul.mubr.f32.vlgmr.msra.gmra.mrb[0].mxu1 %v1401_v30  ;;  %1060 = vmatmul.mubr.f32.vlgmr.msra.gmra.mrb[0].mxu0 %v1401_v30 }
  0x46   :  { %1147 = vmatpush3.bf16.msra.mxu1 %v1146_v51  ;;  %1219 = vmatpush3.bf16.msra.mxu0 %v1345_v12  ;;  %v1155_v12 = vpack.c.bf16 %v1478_v58, %v1476_v57 }
  0x47   :  { %1148 = vmatprep.subr.bf16.mxu1 %v1287_v3  ;;  %1220 = vmatprep.subr.bf16.mxu0 %v1287_v3 }
  0x48   :  { %989 = vmatprep.mubr.msk.f32.mxu1 %vm1288_vm0, %v1289_v11  ;;  %1094 = vmatprep.mubr.msk.f32.mxu0 %vm1288_vm0, %v1289_v11 }
  0x4a   :  { %1150 = vmatpush3.bf16.msra.mxu1 %v1149_v52  ;;  %1222 = vmatpush3.bf16.msra.mxu0 %v1349_v13  ;;  %v1158_v13 = vpack.c.bf16 %v1502_v6, %v1497_v5  ;;  %v711_v6 = vld [vmem:[#allocation5] sm:$0x1] }
  0x4b   :  { %1151 = vmatprep.subr.bf16.mxu1 %v1287_v3  ;;  %1223 = vmatprep.subr.bf16.mxu0 %v1287_v3 }
  0x4e   :  { %1153 = vmatpush3.bf16.msra.mxu1 %v1152_v29  ;;  %1225 = vmatpush3.bf16.msra.mxu0 %v1361_v18  ;;  %v1161_v18 = vpack.c.bf16 %v1523_v24, %v1518_v22 }
  0x4f   :  { %1154 = vmatprep.subr.bf16.mxu1 %v1287_v3  ;;  %1226 = vmatprep.subr.bf16.mxu0 %v1287_v3 }
  0x52   :  { %1156 = vmatpush3.bf16.msra.mxu1 %v1155_v12  ;;  %1228 = vmatpush3.bf16.msra.mxu0 %v1377_v23  ;;  %v1164_v23 = vpack.c.bf16 %v1539_v34, %v1534_v28 }
  0x53   :  { %1157 = vmatprep.subr.bf16.mxu1 %v1287_v3  ;;  %1229 = vmatprep.subr.bf16.mxu0 %v1287_v3 }
  0x56   :  { %1159 = vmatpush3.bf16.msra.mxu1 %v1158_v13  ;;  %1231 = vmatpush3.bf16.msra.mxu0 %v1407_v32 }
  0x57   :  { %1160 = vmatprep.subr.bf16.mxu1 %v1287_v3  ;;  %1232 = vmatprep.subr.bf16.mxu0 %v1287_v3 }
  0x5a   :  { %1162 = vmatpush3.bf16.msra.mxu1 %v1161_v18  ;;  %1234 = vmatpush3.bf16.msra.mxu0 %v1438_v41 }
  0x5b   :  { %1163 = vmatprep.subr.bf16.mxu1 %v1287_v3  ;;  %1235 = vmatprep.subr.bf16.mxu0 %v1287_v3 }
  0x5e   :  { %1165 = vmatpush3.bf16.msra.mxu1 %v1164_v23  ;;  %1237 = vmatpush3.bf16.msra.mxu0 %v1469_v53 }
  0x5f   :  { %1166 = vmatprep.subr.bf16.mxu1 %v1287_v3  ;;  %1238 = vmatprep.subr.bf16.mxu0 %v1287_v3 }
  0x62   :  { %1168 = vmatpush3.bf16.msra.mxu1 %v1167_v31  ;;  %1240 = vmatpush3.bf16.msra.mxu0 %v1493_v0 }
  0x65   :  { %990 = vmatmul.mubr.f32.vlgmr.msra.gmra.mrb[0].mxu1 %v1430_v40  ;;  %1095 = vmatmul.mubr.f32.vlgmr.msra.gmra.mrb[0].mxu0 %v1401_v30 }
  0xa2   :  { %v34_v32 = vpop.xlane.xlu0 %33  ;;  %v707_v41 = vpop.xlane.xlu1 %706 }
  0xa3   :  { %v35_v37 = vmax.f32 %v34_v32, 1e-24 }
  0xa5   :  { %1255 = vrsqrt.f32 %v35_v37 }
  0xaf   :  { %v1256_v38 = vpop.eup %1255 }
  0xb0   :  { %v37_v3 = vmul.f32 14.285714, %v1256_v38 }
  0xb2   :  { %v708_v40 = vmul.f32 %v707_v41, %v37_v3 }
  0xb4   :  { %v710_v30 = vmul.f32 %v709_v47, %v708_v40 }
  0xb6   :  { %v713_v48 = vsel %vm712_vm2, %v710_v30, 0.0 }
  0xb7   :  { %v714_v53 = vrot.slane %v713_v48, 4 }
  0xb9   :  { %v715_v57 = vadd.f32 %v714_v53, %v713_v48 }
  0xbb   :  { %v716_v58 = vrot.slane %v715_v57, 2 }
  0xbd   :  { %v717_v0 = vadd.f32 %v716_v58, %v715_v57 }
  0xbf   :  { %v718_v5 = vrot.slane %v717_v0, 1 }
  0xc1   :  { %v719_v22 = vadd.f32 %v718_v5, %v717_v0 }
  0xc3   :  { %v720_v24 = vadd.f32 %v719_v22, %v711_v6 }
  0xc5   :  { %722 = vst.msk [vmem:[#allocation5] sm:$0x1] %vm28_vm1, %v720_v24 }
  0xcc   :  { %v764_v33 = vld [vmem:[#allocation5] sm:$0x1] }
  0xcd   :  { %v765_v52 = vmul.f32 2.0, %v764_v33 }
 0x138   :  { %v396_v28 = vpop.f32.mrb[0].mxu1  ;;  %v691_v34 = vpop.f32.mrb[0].mxu0 }
 0x139   :  { %v1241_v56 = vadd.f32 %v691_v34, %v396_v28  ;;  %v991_v59 = vpop.f32.mrb[1].mxu1  ;;  %v1096_v35 = vpop.f32.mrb[1].mxu0 }
 0x13b   :  { %v695_v60 = vmul.f32 %v1241_v56, %v37_v3 }
 0x13d   :  { %v703_v36 = vmul.f32 %v783_v39, %v695_v60 }
 0x13f   :  { %v784_v42 = vadd.f32 -14.285714, %v703_v36 }
 0x141   :  { %v724_v61 = vmul.f32 1.442695, %v784_v42 }
 0x143   :  { %1257 = vpow2.f32 %v724_v61 }
 0x14d   :  { %v1258_v62 = vpop.eup %1257 }
 0x14e   :  { %v727_v63 = vsel %vm726_vm4, %v1258_v62, 0.0 }
 0x14f   :  { %728 = vadd.xlane.f32.xlu0 %v727_v63  ;;  %v743_v11 = vrot.slane %v727_v63, 4 }
 0x151   :  { %v744_v1 = vadd.f32 %v743_v11, %v727_v63 }
 0x153   :  { %v745_v2 = vrot.slane %v744_v1, 2 }
 0x155   :  { %v746_v4 = vadd.f32 %v745_v2, %v744_v1 }
 0x157   :  { %v747_v7 = vrot.slane %v746_v4, 1 }
 0x159   :  { %v748_v43 = vadd.f32 %v747_v7, %v746_v4 }
 0x15b   :  { %v749_v44 = vadd.f32 %v748_v43, %v742_v8 }
 0x15d   :  { %751 = vst.msk [vmem:[#allocation2] sm:$0x1] %vm25_vm3, %v749_v44 }
 0x164   :  { %v755_v49 = vld [vmem:[#allocation2] sm:$0x1] }
 0x165   :  { %1259 = vlog2.f32 %v755_v49 }
 0x16f   :  { %v1260_v50 = vpop.eup %1259 }
 0x170   :  { %v757_v9 = vmul.f32 0.6931472, %v1260_v50 }
 0x172   :  { %v758_v10 = vadd.f32 14.285714, %v757_v9 }
 0x174   :  { %v760_v14 = vsel %vm25_vm3, %v758_v10, 0.0 }
 0x175   :  { %761 = vadd.xlane.f32.xlu1 %v760_v14 }
 0x1dc   :  { %v729_v15 = vpop.xlane.xlu0 %728 }
 0x1dd   :  { %1261 = vlog2.f32 %v729_v15 }
 0x1e7   :  { %v1262_v16 = vpop.eup %1261 }
 0x1e8   :  { %v731_v17 = vmul.f32 0.6931472, %v1262_v16 }
 0x1ea   :  { %v732_v19 = vadd.f32 14.285714, %v731_v17 }
 0x1ec   :  { %v734_v20 = vrot.slane %v732_v19, 4 }
 0x1ee   :  { %v735_v21 = vadd.f32 %v734_v20, %v732_v19 }
 0x1f0   :  { %v736_v25 = vrot.slane %v735_v21, 2 }
 0x1f2   :  { %v737_v26 = vadd.f32 %v736_v25, %v735_v21 }
 0x1f4   :  { %v738_v45 = vrot.slane %v737_v26, 1 }
 0x1f6   :  { %v739_v54 = vadd.f32 %v738_v45, %v737_v26 }
 0x1f8   :  { %v740_v27 = vadd.f32 %v739_v54, %v733_v46 }
 0x1fa   :  { %741 = vst.msk [vmem:[#allocation4] sm:$0x1] %vm28_vm1, %v740_v27 }
 0x201   :  { %v759_v55 = vld [vmem:[#allocation4] sm:$0x1] }
 0x202   :  { %v762_v51 = vpop.xlane.xlu1 %761 }
 0x203   :  { %v763_v29 = vadd.f32 %v762_v51, %v759_v55 }
 0x205   :  { %v766_v12 = vsub.f32 %v763_v29, %v765_v52 }
 0x207   :  { %v767_v13 = vmul.f32 0.0625, %v766_v12 }
 0x209   :  { %768 = vst.msk [vmem:[#allocation6] sm:$0x1] %vm28_vm1, %v767_v13 }
 0x20a   :  { %1274 = shalt.err (!%p1271_p4)
}
 0x20b   :  { %s1275_s9 = scalar_lea.hbm %s1663_s5, 16 }
 0x20c   :  { %p1276_p5 = scmp.ne.s32.totalorder %s1663_s5, %s1275_s9  ;;  %p1279_p6 = scmp.lt.u32.totalorder %s1275_s9, %s1663_s5 }
 0x20e   :  { %p1281_p7 = pnand %p1279_p6, %p1276_p5 }
 0x210   :  { %1284 = shalt.err (!%p1281_p7)
}
 0x211   :  { %778 = dma.vmem_to_hbm [thread:$0]  %s776_s29, 16, %s1663_s5, [#allocation7]  }
 0x212   :  { %1285 = dma.done.wait [#allocation7], 16  }
 0x213   :  { %1286 = vsyncadd [#allocation7], 4294967280 }
 0x214   :  { %782 = vsyncpa [#allocation7], 1 }

</bundles_post_ra>
